<compile_context>
chip_gen: v5e
topology: v5e:2x2
jax: 0.10.0
libtpu: 0.0.40
codegen_flags: <defaults>
</compile_context>

<pallas_src>
import functools

import jax
import jax.numpy as jnp
from jax.experimental import pallas as pl
from jax.experimental.pallas import tpu as pltpu

LANE = 128
SUB = 16        # batch-tile granularity (bf16 sublane packing)

_N_PRED = {"sas": 3, "ss": 2, "diff_ss": 1, "diff_ss_a": 2}
_HAS_ACTIONS = {"sas": True, "ss": False, "diff_ss": False, "diff_ss_a": True}


def _round_up(x, m):
    return ((x + m - 1) // m) * m


def _pad_to(a, shape):
    return jnp.pad(a, [(0, t - s) for s, t in zip(a.shape, shape)])


def _vmem_capacity_bytes():
    try:
        return int(pltpu.get_tpu_info().vmem_capacity_bytes)
    except Exception:
        return 64 * 1024 * 1024     # conservative (v7x per-TensorCore VMEM)


# --------------------------------------------------------------------------- #
# Parameter init (PyTorch nn.Linear-style uniform +-1/sqrt(fan_in))
# --------------------------------------------------------------------------- #
def init_cic_params(key, skill_dim, hidden_dim, feature="ss"):
    if feature == "sas":
        input_dim = 3 * hidden_dim
    elif feature in ("ss", "diff_ss_a"):
        input_dim = 2 * hidden_dim
    elif feature == "diff_ss":
        input_dim = hidden_dim
    else:
        raise ValueError(feature)

    def linear(k, fan_in, fan_out):
        kw, kb = jax.random.split(k)
        bound = 1.0 / float(fan_in) ** 0.5
        w = jax.random.uniform(kw, (fan_in, fan_out), jnp.float32, -bound, bound)
        b = jax.random.uniform(kb, (1, fan_out), jnp.float32, -bound, bound)
        return w, b

    k1, k2, k3, k4 = jax.random.split(key, 4)
    pw1, pb1 = linear(k1, input_dim, hidden_dim)      # pred_net layer 1
    pw2, pb2 = linear(k2, hidden_dim, skill_dim)      # pred_net layer 2
    sw1, sb1 = linear(k3, skill_dim, hidden_dim)      # skill_net layer 1
    sw2, sb2 = linear(k4, hidden_dim, skill_dim)      # skill_net layer 2
    return {"pred": (pw1, pb1, pw2, pb2), "skill": (sw1, sb1, sw2, sb2)}


def prepare_cic_params(raw, feature="ss", compute_dtype=jnp.bfloat16):
    """One-time prep: pad to lane-dense dims, split pred layer-1 per input chunk,
    and pack both layer-2 projections into a single output slab.

    Packing: skill_net W2 occupies output lanes [0:skill_dim], pred_net W2 occupies
    lanes [skill_dim:2*skill_dim] of a round_up(2*skill_dim, 128)-wide weight, so
    the kernel emits one lane-dense (batch, Wp) slab holding (query | key).
    """
    pw1, pb1, pw2, pb2 = raw["pred"]
    sw1, sb1, sw2, sb2 = raw["skill"]
    skill_dim, hidden = sw1.shape
    hp = _round_up(hidden, LANE)
    wp = _round_up(2 * skill_dim, LANE)

    n_pred = _N_PRED[feature]
    if pw1.shape[0] != n_pred * hidden:
        raise ValueError(
            f"pred layer-1 has {pw1.shape[0]} input rows, expected "
            f"{n_pred} chunks of width hidden_dim={hidden} for feature={feature!r}")

    pw1_chunks = tuple(
        _pad_to(pw1[j * hidden:(j + 1) * hidden, :], (hidden, hp)).astype(compute_dtype)
        for j in range(n_pred))

    sw2p = jnp.zeros((hp, wp), jnp.float32).at[:hidden, :skill_dim].set(sw2)
    pw2p = jnp.zeros((hp, wp), jnp.float32).at[:hidden, skill_dim:2 * skill_dim].set(pw2)
    b2p = (jnp.zeros((1, wp), jnp.float32)
           .at[:, :skill_dim].set(sb2)
           .at[:, skill_dim:2 * skill_dim].set(pb2))

    return {
        "sw1": _pad_to(sw1, (skill_dim, hp)).astype(compute_dtype),
        "sb1": _pad_to(sb1, (1, hp)),                    # layer-1 biases stay f32
        "sw2p": sw2p.astype(compute_dtype),
        "pw1": pw1_chunks,
        "pb1": _pad_to(pb1, (1, hp)),
        "pw2p": pw2p.astype(compute_dtype),
        "b2p": b2p,                                      # packed layer-2 bias, f32
    }


# --------------------------------------------------------------------------- #
# Kernel
# --------------------------------------------------------------------------- #
def _make_cic_kernel(feature, n_pred, compute_dtype):
    has_actions = _HAS_ACTIONS[feature]

    def kernel(*refs):
        it = iter(refs)
        skill_ref = next(it)
        state_ref = next(it)
        next_state_ref = next(it)
        actions_ref = next(it) if has_actions else None
        sw1_ref, sb1_ref, sw2p_ref = next(it), next(it), next(it)
        pw1_refs = tuple(next(it) for _ in range(n_pred))
        pb1_ref, pw2p_ref, b2p_ref = next(it), next(it), next(it)
        out_ref = next(it)

        # ---- skill_net layer 1 (cast in-kernel; bf16 matmul, f32 accumulate) ----
        hs = jnp.dot(skill_ref[...].astype(compute_dtype), sw1_ref[...],
                     preferred_element_type=jnp.float32)
        hs = jnp.maximum(hs + sb1_ref[...], 0.0)

        # ---- pred_net layer 1: split contraction replaces torch.cat ----
        # (diff for diff_* features is computed in-kernel, in f32, then cast.)
        if feature == "sas":
            xs = (state_ref[...], next_state_ref[...], actions_ref[...])
        elif feature == "ss":
            xs = (state_ref[...], next_state_ref[...])
        elif feature == "diff_ss":
            xs = (next_state_ref[...] - state_ref[...],)
        else:  # "diff_ss_a"
            xs = (next_state_ref[...] - state_ref[...], actions_ref[...])
        hk = pb1_ref[...]
        for x, w_ref in zip(xs, pw1_refs):
            hk = hk + jnp.dot(x.astype(compute_dtype), w_ref[...],
                              preferred_element_type=jnp.float32)
        hk = jnp.maximum(hk, 0.0)

        # ---- packed layer 2: query -> lanes [0:S], key -> lanes [S:2S] ----
        acc = jnp.dot(hs.astype(compute_dtype), sw2p_ref[...],
                      preferred_element_type=jnp.float32)
        acc = acc + jnp.dot(hk.astype(compute_dtype), pw2p_ref[...],
                            preferred_element_type=jnp.float32)
        out_ref[...] = (acc + b2p_ref[...]).astype(out_ref.dtype)

    return kernel


# --------------------------------------------------------------------------- #
# Tile planning: big lane-dense tiles, VMEM-budgeted, >=2 grid steps for v7x.
# --------------------------------------------------------------------------- #
def _plan_tiles(batch, skill_dim, hidden, n_pred, has_actions, hp, wp):
    din = skill_dim + (2 + int(has_actions)) * hidden      # f32 input elems / row
    row_in = 4 * din                                        # f32 streamed inputs
    row_out = 2 * wp                                        # bf16 packed (q|k) slab
    row_work = 12 * hp + 4 * wp + 2 * din                   # intermediates (estimate)
    weight_bytes = (2 * (skill_dim * hp + n_pred * hidden * hp + 2 * hp * wp)
                    + 4 * (2 * hp + wp))                    # bf16 weights + f32 biases
    cap = _vmem_capacity_bytes()
    budget = max(int(0.6 * cap) - weight_bytes, 2 << 20)
    per_row = 2 * (row_in + row_out) + row_work             # double-buffered I/O tiles

    tb = SUB
    for cand in (2048, 1024, 512, 256, 128, 64, 32, 16):
        if cand * per_row <= budget:
            tb = cand
            break
    padded = _round_up(max(batch, SUB), SUB)
    if padded >= 2 * SUB:          # keep >=2 grid steps so v7x megacore can shard
        tb = min(tb, _round_up(pl.cdiv(padded, 2), SUB))
    tb = min(tb, padded)
    padded = tb * pl.cdiv(batch, tb)

    vmem_limit = int(min(int(0.9 * cap),
                         max(weight_bytes + tb * per_row * 3 // 2, 32 << 20)))
    return tb, padded, vmem_limit


# --------------------------------------------------------------------------- #
# Forward
# --------------------------------------------------------------------------- #
@functools.partial(jax.jit, static_argnames=("feature", "single_buffer_weights"))
def _cic_forward_impl(params, state, next_state, skill, actions, *,
                      feature, single_buffer_weights):
    if feature not in _N_PRED:
        raise ValueError(feature)
    assert state.ndim == next_state.ndim == 2

    sw1, sb1, sw2p = params["sw1"], params["sb1"], params["sw2p"]
    pw1_chunks = tuple(params["pw1"])
    pb1, pw2p, b2p = params["pb1"], params["pw2p"], params["b2p"]

    skill_dim, hp = sw1.shape
    wp = sw2p.shape[1]
    hidden = pw1_chunks[0].shape[0]
    n_pred = len(pw1_chunks)
    has_actions = _HAS_ACTIONS[feature]
    assert n_pred == _N_PRED[feature], "params were prepared for a different feature"

    # Module semantics: state/next_state/action features are hidden_dim wide
    # (pred_net input_dim = n_pred * hidden_dim); skill is skill_dim wide.
    assert skill.shape[1] == skill_dim
    assert state.shape[1] == hidden and next_state.shape[1] == hidden
    if has_actions:
        assert actions is not None and actions.shape[1] == hidden

    batch = skill.shape[0]
    compute_dtype = sw1.dtype

    tb, padded_batch, vmem_limit = _plan_tiles(
        batch, skill_dim, hidden, n_pred, has_actions, hp, wp)

    data = [skill, state, next_state] + ([actions] if has_actions else [])
    if padded_batch != batch:
        data = [jnp.pad(x, ((0, padded_batch - batch), (0, 0))) for x in data]

    batch_map = lambda i: (i, 0)
    fixed_map = lambda i: (0, 0)
    if single_buffer_weights:
        # Grid-invariant weights: single buffer saves VMEM for bigger batch tiles.
        wspec = lambda a: pl.BlockSpec(a.shape, fixed_map, pipeline_mode=pl.Buffered(1))
    else:
        wspec = lambda a: pl.BlockSpec(a.shape, fixed_map)

    weights = [sw1, sb1, sw2p, *pw1_chunks, pb1, pw2p, b2p]
    in_specs = ([pl.BlockSpec((tb, x.shape[1]), batch_map) for x in data]
                + [wspec(w) for w in weights])
    out_specs = pl.BlockSpec((tb, wp), batch_map)
    out_shape = jax.ShapeDtypeStruct((padded_batch, wp), jnp.bfloat16)

    flops = 2 * padded_batch * hp * (skill_dim + n_pred * hidden + 2 * wp)
    bytes_accessed = (sum(int(a.size) * a.dtype.itemsize for a in data + weights)
                      + padded_batch * wp * 2)

    packed = pl.pallas_call(
        _make_cic_kernel(feature, n_pred, compute_dtype),
        grid=(padded_batch // tb,),
        in_specs=in_specs,
        out_specs=out_specs,
        out_shape=out_shape,
        compiler_params=pltpu.CompilerParams(
            dimension_semantics=("parallel",),
            vmem_limit_bytes=vmem_limit),
        cost_estimate=pl.CostEstimate(flops=flops, transcendentals=0,
                                      bytes_accessed=bytes_accessed),
    )(*data, *weights)

    # Unpack (query | key).  Fused consumers (e.g. the contrastive logits
    # q @ k.T) can take `packed` directly and skip this small slice pass.
    query = packed[:batch, :skill_dim]
    key = packed[:batch, skill_dim:2 * skill_dim]
    return query, key


_SINGLE_BUFFER_WEIGHTS = True


def cic_forward(params, state, next_state, skill, actions=None, *, feature="ss"):
    """Mirrors CIC.forward (project_skill=True): returns (query, key), bf16 (batch, skill_dim)."""
    global _SINGLE_BUFFER_WEIGHTS
    try:
        return _cic_forward_impl(params, state, next_state, skill, actions,
                                 feature=feature,
                                 single_buffer_weights=_SINGLE_BUFFER_WEIGHTS)
    except Exception:
        if not _SINGLE_BUFFER_WEIGHTS:
            raise
        # Fallback for jax/Mosaic versions that reject single-buffered
        # (pl.Buffered(1)) operands in the pallas_call pipeline.
        _SINGLE_BUFFER_WEIGHTS = False
        return _cic_forward_impl(params, state, next_state, skill, actions,
                                 feature=feature, single_buffer_weights=False)


# --------------------------------------------------------------------------- #
# Pure-jnp f32 reference (exact module semantics) for correctness checking.
# --------------------------------------------------------------------------- #
def _reference_forward(raw, state, next_state, skill, actions, feature="ss"):
    pw1, pb1, pw2, pb2 = raw["pred"]
    sw1, sb1, sw2, sb2 = raw["skill"]

    def mlp(x, w1, b1, w2, b2):
        return jnp.maximum(x @ w1 + b1, 0.0) @ w2 + b2

    query = mlp(skill, sw1, sb1, sw2, sb2)
    if feature == "sas":
        pred_in = jnp.concatenate([state, next_state, actions], axis=1)
    elif feature == "ss":
        pred_in = jnp.concatenate([state, next_state], axis=1)
    elif feature == "diff_ss":
        pred_in = next_state - state
    elif feature == "diff_ss_a":
        pred_in = jnp.concatenate([next_state - state, actions], axis=1)
    else:
        raise ValueError(feature)
    key = mlp(pred_in, pw1, pb1, pw2, pb2)
    return query, key


if __name__ == "__main__":
    # Small, module-consistent shapes: state/next_state/action features are
    # hidden_dim wide (implied by input_dim = n_pred * hidden_dim).
    batch = 8
    hidden_dim = 32
    skill_dim = 16

    root = jax.random.PRNGKey(0)
    kp1, kp2, ks, kn, kz, ka = jax.random.split(root, 6)

    state = jax.random.normal(ks, (batch, hidden_dim), jnp.float32)
    next_state = jax.random.normal(kn, (batch, hidden_dim), jnp.float32)
    skill = jax.random.normal(kz, (batch, skill_dim), jnp.float32)
    actions = jax.random.normal(ka, (batch, hidden_dim), jnp.float32)

    for feature, kparam in (("ss", kp1), ("diff_ss_a", kp2)):
        raw_params = init_cic_params(kparam, skill_dim, hidden_dim, feature)
        params = prepare_cic_params(raw_params, feature=feature)

        query, key = cic_forward(params, state, next_state, skill, actions,
                                 feature=feature)
        query = jax.block_until_ready(query)
        key = jax.block_until_ready(key)

        q_ref, k_ref = _reference_forward(raw_params, state, next_state, skill,
                                          actions, feature)
        assert query.shape == (batch, skill_dim) and key.shape == (batch, skill_dim)
        # bf16 matmul operands + bf16 outputs vs the f32 reference -> loose tolerance.
        assert jnp.allclose(query.astype(jnp.float32), q_ref, atol=5e-2, rtol=5e-2), \
            f"query mismatch vs reference ({feature})"
        assert jnp.allclose(key.astype(jnp.float32), k_ref, atol=5e-2, rtol=5e-2), \
            f"key mismatch vs reference ({feature})"

    print("KERNEL_OK")
</pallas_src>

<mosaic_0001>
module attributes {stable_mosaic.version = 11 : i64} {
  func.func @kernel(%arg0: i32, %arg1: memref<16x16xf32, #tpu.memory_space<vmem>>, %arg2: memref<16x32xf32, #tpu.memory_space<vmem>>, %arg3: memref<16x32xf32, #tpu.memory_space<vmem>>, %arg4: memref<16x128xbf16, #tpu.memory_space<vmem>>, %arg5: memref<1x128xf32, #tpu.memory_space<vmem>>, %arg6: memref<128x128xbf16, #tpu.memory_space<vmem>>, %arg7: memref<32x128xbf16, #tpu.memory_space<vmem>>, %arg8: memref<32x128xbf16, #tpu.memory_space<vmem>>, %arg9: memref<1x128xf32, #tpu.memory_space<vmem>>, %arg10: memref<128x128xbf16, #tpu.memory_space<vmem>>, %arg11: memref<1x128xf32, #tpu.memory_space<vmem>>, %arg12: memref<16x128xbf16, #tpu.memory_space<vmem>>) attributes {dimension_semantics = [#tpu.dimension_semantics<parallel>], iteration_bounds = array<i64: 1>, scalar_prefetch = 0 : i64, scratch_operands = 0 : i64, tpu.core_type = #tpu.core_type<tc>, window_params = [{transform_indices = @transform_0, window_bounds = array<i64: 16, 16>}, {transform_indices = @transform_1, window_bounds = array<i64: 16, 32>}, {transform_indices = @transform_2, window_bounds = array<i64: 16, 32>}, {pipeline_mode = #tpu.pipeline_mode<synchronous>, transform_indices = @transform_3, window_bounds = array<i64: 16, 128>}, {pipeline_mode = #tpu.pipeline_mode<synchronous>, transform_indices = @transform_4, window_bounds = array<i64: 1, 128>}, {pipeline_mode = #tpu.pipeline_mode<synchronous>, transform_indices = @transform_5, window_bounds = array<i64: 128, 128>}, {pipeline_mode = #tpu.pipeline_mode<synchronous>, transform_indices = @transform_6, window_bounds = array<i64: 32, 128>}, {pipeline_mode = #tpu.pipeline_mode<synchronous>, transform_indices = @transform_7, window_bounds = array<i64: 32, 128>}, {pipeline_mode = #tpu.pipeline_mode<synchronous>, transform_indices = @transform_8, window_bounds = array<i64: 1, 128>}, {pipeline_mode = #tpu.pipeline_mode<synchronous>, transform_indices = @transform_9, window_bounds = array<i64: 128, 128>}, {pipeline_mode = #tpu.pipeline_mode<synchronous>, transform_indices = @transform_10, window_bounds = array<i64: 1, 128>}, {transform_indices = @transform_11, window_bounds = array<i64: 16, 128>}]} {
    %c0 = arith.constant 0 : index
    %c0_0 = arith.constant 0 : index
    %0 = vector.load %arg1[%c0, %c0_0] : memref<16x16xf32, #tpu.memory_space<vmem>>, vector<16x16xf32>
    %1 = arith.truncf %0 : vector<16x16xf32> to vector<16x16xbf16>
    %c0_1 = arith.constant 0 : index
    %c0_2 = arith.constant 0 : index
    %2 = vector.load %arg4[%c0_1, %c0_2] : memref<16x128xbf16, #tpu.memory_space<vmem>>, vector<16x128xbf16>
    %cst = arith.constant dense<0.000000e+00> : vector<16x128xf32>
    %3 = tpu.matmul %1, %2, %cst {dimension_numbers = #tpu.dot_dimension_numbers<[1], [0], [0], [1], [0, 0, 1, 1], [], []>} : vector<16x16xbf16>, vector<16x128xbf16>, vector<16x128xf32> -> vector<16x128xf32>
    %c0_3 = arith.constant 0 : index
    %c0_4 = arith.constant 0 : index
    %4 = vector.load %arg5[%c0_3, %c0_4] : memref<1x128xf32, #tpu.memory_space<vmem>>, vector<1x128xf32>
    %5 = vector.broadcast %4 : vector<1x128xf32> to vector<16x128xf32>
    %6 = arith.addf %3, %5 : vector<16x128xf32>
    %cst_5 = arith.constant 0.000000e+00 : f32
    %7 = vector.broadcast %cst_5 : f32 to vector<16x128xf32>
    %8 = arith.maximumf %6, %7 : vector<16x128xf32>
    %c0_6 = arith.constant 0 : index
    %c0_7 = arith.constant 0 : index
    %9 = vector.load %arg2[%c0_6, %c0_7] : memref<16x32xf32, #tpu.memory_space<vmem>>, vector<16x32xf32>
    %c0_8 = arith.constant 0 : index
    %c0_9 = arith.constant 0 : index
    %10 = vector.load %arg3[%c0_8, %c0_9] : memref<16x32xf32, #tpu.memory_space<vmem>>, vector<16x32xf32>
    %c0_10 = arith.constant 0 : index
    %c0_11 = arith.constant 0 : index
    %11 = vector.load %arg9[%c0_10, %c0_11] : memref<1x128xf32, #tpu.memory_space<vmem>>, vector<1x128xf32>
    %12 = arith.truncf %9 : vector<16x32xf32> to vector<16x32xbf16>
    %c0_12 = arith.constant 0 : index
    %c0_13 = arith.constant 0 : index
    %13 = vector.load %arg7[%c0_12, %c0_13] : memref<32x128xbf16, #tpu.memory_space<vmem>>, vector<32x128xbf16>
    %cst_14 = arith.constant dense<0.000000e+00> : vector<16x128xf32>
    %14 = tpu.matmul %12, %13, %cst_14 {dimension_numbers = #tpu.dot_dimension_numbers<[1], [0], [0], [1], [0, 0, 1, 1], [], []>} : vector<16x32xbf16>, vector<32x128xbf16>, vector<16x128xf32> -> vector<16x128xf32>
    %15 = vector.broadcast %11 : vector<1x128xf32> to vector<16x128xf32>
    %16 = arith.addf %15, %14 : vector<16x128xf32>
    %17 = arith.truncf %10 : vector<16x32xf32> to vector<16x32xbf16>
    %c0_15 = arith.constant 0 : index
    %c0_16 = arith.constant 0 : index
    %18 = vector.load %arg8[%c0_15, %c0_16] : memref<32x128xbf16, #tpu.memory_space<vmem>>, vector<32x128xbf16>
    %cst_17 = arith.constant dense<0.000000e+00> : vector<16x128xf32>
    %19 = tpu.matmul %17, %18, %cst_17 {dimension_numbers = #tpu.dot_dimension_numbers<[1], [0], [0], [1], [0, 0, 1, 1], [], []>} : vector<16x32xbf16>, vector<32x128xbf16>, vector<16x128xf32> -> vector<16x128xf32>
    %20 = arith.addf %16, %19 : vector<16x128xf32>
    %cst_18 = arith.constant 0.000000e+00 : f32
    %21 = vector.broadcast %cst_18 : f32 to vector<16x128xf32>
    %22 = arith.maximumf %20, %21 : vector<16x128xf32>
    %23 = arith.truncf %8 : vector<16x128xf32> to vector<16x128xbf16>
    %c0_19 = arith.constant 0 : index
    %c0_20 = arith.constant 0 : index
    %24 = vector.load %arg6[%c0_19, %c0_20] : memref<128x128xbf16, #tpu.memory_space<vmem>>, vector<128x128xbf16>
    %cst_21 = arith.constant dense<0.000000e+00> : vector<16x128xf32>
    %25 = tpu.matmul %23, %24, %cst_21 {dimension_numbers = #tpu.dot_dimension_numbers<[1], [0], [0], [1], [0, 0, 1, 1], [], []>} : vector<16x128xbf16>, vector<128x128xbf16>, vector<16x128xf32> -> vector<16x128xf32>
    %26 = arith.truncf %22 : vector<16x128xf32> to vector<16x128xbf16>
    %c0_22 = arith.constant 0 : index
    %c0_23 = arith.constant 0 : index
    %27 = vector.load %arg10[%c0_22, %c0_23] : memref<128x128xbf16, #tpu.memory_space<vmem>>, vector<128x128xbf16>
    %cst_24 = arith.constant dense<0.000000e+00> : vector<16x128xf32>
    %28 = tpu.matmul %26, %27, %cst_24 {dimension_numbers = #tpu.dot_dimension_numbers<[1], [0], [0], [1], [0, 0, 1, 1], [], []>} : vector<16x128xbf16>, vector<128x128xbf16>, vector<16x128xf32> -> vector<16x128xf32>
    %29 = arith.addf %25, %28 : vector<16x128xf32>
    %c0_25 = arith.constant 0 : index
    %c0_26 = arith.constant 0 : index
    %30 = vector.load %arg11[%c0_25, %c0_26] : memref<1x128xf32, #tpu.memory_space<vmem>>, vector<1x128xf32>
    %31 = vector.broadcast %30 : vector<1x128xf32> to vector<16x128xf32>
    %32 = arith.addf %29, %31 : vector<16x128xf32>
    %33 = arith.truncf %32 : vector<16x128xf32> to vector<16x128xbf16>
    %c0_27 = arith.constant 0 : index
    %c0_28 = arith.constant 0 : index
    %34 = vector.load %arg12[%c0_27, %c0_28] : memref<16x128xbf16, #tpu.memory_space<vmem>>, vector<16x128xbf16>
    tpu.vector_store %arg12[%c0_27, %c0_28], %33 {strides = array<i32>} : memref<16x128xbf16, #tpu.memory_space<vmem>>, vector<16x128xbf16>,
    return
  }
  func.func @transform_0(%arg0: i32) -> (i32, i32) {
    %c0_i32 = arith.constant 0 : i32
    %c0_i32_0 = arith.constant 0 : i32
    return %arg0, %c0_i32 : i32, i32
  }
  func.func @transform_1(%arg0: i32) -> (i32, i32) {
    %c0_i32 = arith.constant 0 : i32
    %c0_i32_0 = arith.constant 0 : i32
    return %arg0, %c0_i32 : i32, i32
  }
  func.func @transform_2(%arg0: i32) -> (i32, i32) {
    %c0_i32 = arith.constant 0 : i32
    %c0_i32_0 = arith.constant 0 : i32
    return %arg0, %c0_i32 : i32, i32
  }
  func.func @transform_3(%arg0: i32) -> (i32, i32) {
    %c0_i32 = arith.constant 0 : i32
    %c0_i32_0 = arith.constant 0 : i32
    %c0_i32_1 = arith.constant 0 : i32
    return %c0_i32, %c0_i32_0 : i32, i32
  }
  func.func @transform_4(%arg0: i32) -> (i32, i32) {
    %c0_i32 = arith.constant 0 : i32
    %c0_i32_0 = arith.constant 0 : i32
    %c0_i32_1 = arith.constant 0 : i32
    return %c0_i32, %c0_i32_0 : i32, i32
  }
  func.func @transform_5(%arg0: i32) -> (i32, i32) {
    %c0_i32 = arith.constant 0 : i32
    %c0_i32_0 = arith.constant 0 : i32
    %c0_i32_1 = arith.constant 0 : i32
    return %c0_i32, %c0_i32_0 : i32, i32
  }
  func.func @transform_6(%arg0: i32) -> (i32, i32) {
    %c0_i32 = arith.constant 0 : i32
    %c0_i32_0 = arith.constant 0 : i32
    %c0_i32_1 = arith.constant 0 : i32
    return %c0_i32, %c0_i32_0 : i32, i32
  }
  func.func @transform_7(%arg0: i32) -> (i32, i32) {
    %c0_i32 = arith.constant 0 : i32
    %c0_i32_0 = arith.constant 0 : i32
    %c0_i32_1 = arith.constant 0 : i32
    return %c0_i32, %c0_i32_0 : i32, i32
  }
  func.func @transform_8(%arg0: i32) -> (i32, i32) {
    %c0_i32 = arith.constant 0 : i32
    %c0_i32_0 = arith.constant 0 : i32
    %c0_i32_1 = arith.constant 0 : i32
    return %c0_i32, %c0_i32_0 : i32, i32
  }
  func.func @transform_9(%arg0: i32) -> (i32, i32) {
    %c0_i32 = arith.constant 0 : i32
    %c0_i32_0 = arith.constant 0 : i32
    %c0_i32_1 = arith.constant 0 : i32
    return %c0_i32, %c0_i32_0 : i32, i32
  }
  func.func @transform_10(%arg0: i32) -> (i32, i32) {
    %c0_i32 = arith.constant 0 : i32
    %c0_i32_0 = arith.constant 0 : i32
    %c0_i32_1 = arith.constant 0 : i32
    return %c0_i32, %c0_i32_0 : i32, i32
  }
  func.func @transform_11(%arg0: i32) -> (i32, i32) {
    %c0_i32 = arith.constant 0 : i32
    %c0_i32_0 = arith.constant 0 : i32
    return %arg0, %c0_i32 : i32, i32
  }
}

module attributes {stable_mosaic.version = 11 : i64} {
  func.func @kernel(%arg0: i32, %arg1: memref<16x16xf32, #tpu.memory_space<vmem>>, %arg2: memref<16x32xf32, #tpu.memory_space<vmem>>, %arg3: memref<16x32xf32, #tpu.memory_space<vmem>>, %arg4: memref<16x128xbf16, #tpu.memory_space<vmem>>, %arg5: memref<1x128xf32, #tpu.memory_space<vmem>>, %arg6: memref<128x128xbf16, #tpu.memory_space<vmem>>, %arg7: memref<32x128xbf16, #tpu.memory_space<vmem>>, %arg8: memref<32x128xbf16, #tpu.memory_space<vmem>>, %arg9: memref<1x128xf32, #tpu.memory_space<vmem>>, %arg10: memref<128x128xbf16, #tpu.memory_space<vmem>>, %arg11: memref<1x128xf32, #tpu.memory_space<vmem>>, %arg12: memref<16x128xbf16, #tpu.memory_space<vmem>>) attributes {dimension_semantics = [#tpu.dimension_semantics<parallel>], iteration_bounds = array<i64: 1>, scalar_prefetch = 0 : i64, scratch_operands = 0 : i64, tpu.core_type = #tpu.core_type<tc>, window_params = [{transform_indices = @transform_0, window_bounds = array<i64: 16, 16>}, {transform_indices = @transform_1, window_bounds = array<i64: 16, 32>}, {transform_indices = @transform_2, window_bounds = array<i64: 16, 32>}, {pipeline_mode = #tpu.pipeline_mode<synchronous>, transform_indices = @transform_3, window_bounds = array<i64: 16, 128>}, {pipeline_mode = #tpu.pipeline_mode<synchronous>, transform_indices = @transform_4, window_bounds = array<i64: 1, 128>}, {pipeline_mode = #tpu.pipeline_mode<synchronous>, transform_indices = @transform_5, window_bounds = array<i64: 128, 128>}, {pipeline_mode = #tpu.pipeline_mode<synchronous>, transform_indices = @transform_6, window_bounds = array<i64: 32, 128>}, {pipeline_mode = #tpu.pipeline_mode<synchronous>, transform_indices = @transform_7, window_bounds = array<i64: 32, 128>}, {pipeline_mode = #tpu.pipeline_mode<synchronous>, transform_indices = @transform_8, window_bounds = array<i64: 1, 128>}, {pipeline_mode = #tpu.pipeline_mode<synchronous>, transform_indices = @transform_9, window_bounds = array<i64: 128, 128>}, {pipeline_mode = #tpu.pipeline_mode<synchronous>, transform_indices = @transform_10, window_bounds = array<i64: 1, 128>}, {transform_indices = @transform_11, window_bounds = array<i64: 16, 128>}]} {
    %c0 = arith.constant 0 : index
    %c0_0 = arith.constant 0 : index
    %0 = vector.load %arg1[%c0, %c0_0] : memref<16x16xf32, #tpu.memory_space<vmem>>, vector<16x16xf32>
    %1 = arith.truncf %0 : vector<16x16xf32> to vector<16x16xbf16>
    %c0_1 = arith.constant 0 : index
    %c0_2 = arith.constant 0 : index
    %2 = vector.load %arg4[%c0_1, %c0_2] : memref<16x128xbf16, #tpu.memory_space<vmem>>, vector<16x128xbf16>
    %cst = arith.constant dense<0.000000e+00> : vector<16x128xf32>
    %3 = tpu.matmul %1, %2, %cst {dimension_numbers = #tpu.dot_dimension_numbers<[1], [0], [0], [1], [0, 0, 1, 1], [], []>} : vector<16x16xbf16>, vector<16x128xbf16>, vector<16x128xf32> -> vector<16x128xf32>
    %c0_3 = arith.constant 0 : index
    %c0_4 = arith.constant 0 : index
    %4 = vector.load %arg5[%c0_3, %c0_4] : memref<1x128xf32, #tpu.memory_space<vmem>>, vector<1x128xf32>
    %5 = vector.broadcast %4 : vector<1x128xf32> to vector<16x128xf32>
    %6 = arith.addf %3, %5 : vector<16x128xf32>
    %cst_5 = arith.constant 0.000000e+00 : f32
    %7 = vector.broadcast %cst_5 : f32 to vector<16x128xf32>
    %8 = arith.maximumf %6, %7 : vector<16x128xf32>
    %c0_6 = arith.constant 0 : index
    %c0_7 = arith.constant 0 : index
    %9 = vector.load %arg2[%c0_6, %c0_7] : memref<16x32xf32, #tpu.memory_space<vmem>>, vector<16x32xf32>
    %c0_8 = arith.constant 0 : index
    %c0_9 = arith.constant 0 : index
    %10 = vector.load %arg3[%c0_8, %c0_9] : memref<16x32xf32, #tpu.memory_space<vmem>>, vector<16x32xf32>
    %c0_10 = arith.constant 0 : index
    %c0_11 = arith.constant 0 : index
    %11 = vector.load %arg9[%c0_10, %c0_11] : memref<1x128xf32, #tpu.memory_space<vmem>>, vector<1x128xf32>
    %12 = arith.truncf %9 : vector<16x32xf32> to vector<16x32xbf16>
    %c0_12 = arith.constant 0 : index
    %c0_13 = arith.constant 0 : index
    %13 = vector.load %arg7[%c0_12, %c0_13] : memref<32x128xbf16, #tpu.memory_space<vmem>>, vector<32x128xbf16>
    %cst_14 = arith.constant dense<0.000000e+00> : vector<16x128xf32>
    %14 = tpu.matmul %12, %13, %cst_14 {dimension_numbers = #tpu.dot_dimension_numbers<[1], [0], [0], [1], [0, 0, 1, 1], [], []>} : vector<16x32xbf16>, vector<32x128xbf16>, vector<16x128xf32> -> vector<16x128xf32>
    %15 = vector.broadcast %11 : vector<1x128xf32> to vector<16x128xf32>
    %16 = arith.addf %15, %14 : vector<16x128xf32>
    %17 = arith.truncf %10 : vector<16x32xf32> to vector<16x32xbf16>
    %c0_15 = arith.constant 0 : index
    %c0_16 = arith.constant 0 : index
    %18 = vector.load %arg8[%c0_15, %c0_16] : memref<32x128xbf16, #tpu.memory_space<vmem>>, vector<32x128xbf16>
    %cst_17 = arith.constant dense<0.000000e+00> : vector<16x128xf32>
    %19 = tpu.matmul %17, %18, %cst_17 {dimension_numbers = #tpu.dot_dimension_numbers<[1], [0], [0], [1], [0, 0, 1, 1], [], []>} : vector<16x32xbf16>, vector<32x128xbf16>, vector<16x128xf32> -> vector<16x128xf32>
    %20 = arith.addf %16, %19 : vector<16x128xf32>
    %cst_18 = arith.constant 0.000000e+00 : f32
    %21 = vector.broadcast %cst_18 : f32 to vector<16x128xf32>
    %22 = arith.maximumf %20, %21 : vector<16x128xf32>
    %23 = arith.truncf %8 : vector<16x128xf32> to vector<16x128xbf16>
    %c0_19 = arith.constant 0 : index
    %c0_20 = arith.constant 0 : index
    %24 = vector.load %arg6[%c0_19, %c0_20] : memref<128x128xbf16, #tpu.memory_space<vmem>>, vector<128x128xbf16>
    %cst_21 = arith.constant dense<0.000000e+00> : vector<16x128xf32>
    %25 = tpu.matmul %23, %24, %cst_21 {dimension_numbers = #tpu.dot_dimension_numbers<[1], [0], [0], [1], [0, 0, 1, 1], [], []>} : vector<16x128xbf16>, vector<128x128xbf16>, vector<16x128xf32> -> vector<16x128xf32>
    %26 = arith.truncf %22 : vector<16x128xf32> to vector<16x128xbf16>
    %c0_22 = arith.constant 0 : index
    %c0_23 = arith.constant 0 : index
    %27 = vector.load %arg10[%c0_22, %c0_23] : memref<128x128xbf16, #tpu.memory_space<vmem>>, vector<128x128xbf16>
    %cst_24 = arith.constant dense<0.000000e+00> : vector<16x128xf32>
    %28 = tpu.matmul %26, %27, %cst_24 {dimension_numbers = #tpu.dot_dimension_numbers<[1], [0], [0], [1], [0, 0, 1, 1], [], []>} : vector<16x128xbf16>, vector<128x128xbf16>, vector<16x128xf32> -> vector<16x128xf32>
    %29 = arith.addf %25, %28 : vector<16x128xf32>
    %c0_25 = arith.constant 0 : index
    %c0_26 = arith.constant 0 : index
    %30 = vector.load %arg11[%c0_25, %c0_26] : memref<1x128xf32, #tpu.memory_space<vmem>>, vector<1x128xf32>
    %31 = vector.broadcast %30 : vector<1x128xf32> to vector<16x128xf32>
    %32 = arith.addf %29, %31 : vector<16x128xf32>
    %33 = arith.truncf %32 : vector<16x128xf32> to vector<16x128xbf16>
    %c0_27 = arith.constant 0 : index
    %c0_28 = arith.constant 0 : index
    %34 = vector.load %arg12[%c0_27, %c0_28] : memref<16x128xbf16, #tpu.memory_space<vmem>>, vector<16x128xbf16>
    tpu.vector_store %arg12[%c0_27, %c0_28], %33 {strides = array<i32>} : memref<16x128xbf16, #tpu.memory_space<vmem>>, vector<16x128xbf16>,
    return
  }
  func.func @transform_0(%arg0: i32) -> (i32, i32) {
    %c0_i32 = arith.constant 0 : i32
    %c0_i32_0 = arith.constant 0 : i32
    return %arg0, %c0_i32 : i32, i32
  }
  func.func @transform_1(%arg0: i32) -> (i32, i32) {
    %c0_i32 = arith.constant 0 : i32
    %c0_i32_0 = arith.constant 0 : i32
    return %arg0, %c0_i32 : i32, i32
  }
  func.func @transform_2(%arg0: i32) -> (i32, i32) {
    %c0_i32 = arith.constant 0 : i32
    %c0_i32_0 = arith.constant 0 : i32
    return %arg0, %c0_i32 : i32, i32
  }
  func.func @transform_3(%arg0: i32) -> (i32, i32) {
    %c0_i32 = arith.constant 0 : i32
    %c0_i32_0 = arith.constant 0 : i32
    %c0_i32_1 = arith.constant 0 : i32
    return %c0_i32, %c0_i32_0 : i32, i32
  }
  func.func @transform_4(%arg0: i32) -> (i32, i32) {
    %c0_i32 = arith.constant 0 : i32
    %c0_i32_0 = arith.constant 0 : i32
    %c0_i32_1 = arith.constant 0 : i32
    return %c0_i32, %c0_i32_0 : i32, i32
  }
  func.func @transform_5(%arg0: i32) -> (i32, i32) {
    %c0_i32 = arith.constant 0 : i32
    %c0_i32_0 = arith.constant 0 : i32
    %c0_i32_1 = arith.constant 0 : i32
    return %c0_i32, %c0_i32_0 : i32, i32
  }
  func.func @transform_6(%arg0: i32) -> (i32, i32) {
    %c0_i32 = arith.constant 0 : i32
    %c0_i32_0 = arith.constant 0 : i32
    %c0_i32_1 = arith.constant 0 : i32
    return %c0_i32, %c0_i32_0 : i32, i32
  }
  func.func @transform_7(%arg0: i32) -> (i32, i32) {
    %c0_i32 = arith.constant 0 : i32
    %c0_i32_0 = arith.constant 0 : i32
    %c0_i32_1 = arith.constant 0 : i32
    return %c0_i32, %c0_i32_0 : i32, i32
  }
  func.func @transform_8(%arg0: i32) -> (i32, i32) {
    %c0_i32 = arith.constant 0 : i32
    %c0_i32_0 = arith.constant 0 : i32
    %c0_i32_1 = arith.constant 0 : i32
    return %c0_i32, %c0_i32_0 : i32, i32
  }
  func.func @transform_9(%arg0: i32) -> (i32, i32) {
    %c0_i32 = arith.constant 0 : i32
    %c0_i32_0 = arith.constant 0 : i32
    %c0_i32_1 = arith.constant 0 : i32
    return %c0_i32, %c0_i32_0 : i32, i32
  }
  func.func @transform_10(%arg0: i32) -> (i32, i32) {
    %c0_i32 = arith.constant 0 : i32
    %c0_i32_0 = arith.constant 0 : i32
    %c0_i32_1 = arith.constant 0 : i32
    return %c0_i32, %c0_i32_0 : i32, i32
  }
  func.func @transform_11(%arg0: i32) -> (i32, i32) {
    %c0_i32 = arith.constant 0 : i32
    %c0_i32_0 = arith.constant 0 : i32
    return %arg0, %c0_i32 : i32, i32
  }
}

</mosaic_0001>

<bundles_post_ra>
// kernel: _cic_forward_impl.1
= control target key start
LH: loop header
LB: loop body
LE: loop exit
PB: predicated region body
PF: predicated region fallthrough
CT: control target
= control target key end

     0   :  { %16 = vsyncpa [#allocation3], 0  ;;  %s791_s0 = inlined_call_operand.vmem [shape: f32[16,16], index: 0, kind: input, shape index: {}]   ;;  %s792_s1 = inlined_call_operand.vmem [shape: f32[16,32], index: 1, kind: input, shape index: {}]   ;;  %s793_s2 = inlined_call_operand.vmem [shape: f32[16,32], index: 2, kind: input, shape index: {}]   ;;  %s794_s3 = inlined_call_operand.hbm [shape: bf16[16,128], index: 3, kind: input, shape index: {}]   ;;  %s795_s4 = inlined_call_operand.vmem [shape: f32[1,128], index: 4, kind: input, shape index: {}]   ;;  %s796_s5 = inlined_call_operand.vmem [shape: bf16[128,128], index: 5, kind: input, shape index: {}]   ;;  %s797_s6 = inlined_call_operand.vmem [shape: bf16[32,128], index: 6, kind: input, shape index: {}]   ;;  %s798_s7 = inlined_call_operand.hbm [shape: bf16[32,128], index: 7, kind: input, shape index: {}]   ;;  %s799_s8 = inlined_call_operand.hbm [shape: f32[1,128], index: 8, kind: input, shape index: {}]   ;;  %s800_s9 = inlined_call_operand.hbm [shape: bf16[128,128], index: 9, kind: input, shape index: {}]   ;;  %s801_s10 = inlined_call_operand.hbm [shape: f32[1,128], index: 10, kind: input, shape index: {}]   ;;  %s802_s11 = inlined_call_operand.vmem [shape: bf16[16,128], index: 11, kind: output, shape index: {}]  }
   0x1   :  { %17 = vsyncpa [#allocation5], 0 }
   0x2   :  { %18 = vsyncpa [#allocation8], 0  ;;  %s48_s19 = sshll.u32 %s798_s7, 4  ;;  %s655_s20 = smov [#allocation4]   ;;  %s49_s19 = int_to_ptr.hbm [resolvable:$true] %s48_s19 }
   0x3   :  { %s50_s21 = sshll.u32 %s655_s20, 4  ;;  %s72_s24 = sshll.u32 %s800_s9, 4  ;;  %s51_s21 = int_to_ptr.vmem [resolvable:$true] %s50_s21  ;;  %s73_s24 = int_to_ptr.hbm [resolvable:$true] %s72_s24 }
   0x4   :  { %s656_s25 = smov 64   ;;  %s657_s26 = smov 4  }
   0x5   :  { %56 = dma.hbm_to_vmem [thread:$0]  %s49_s19, 256, %s51_s21, [#allocation5], %s656_s25, %s656_s25, %s657_s26  }
   0x6   :  { %s658_s27 = smov [#allocation7]   ;;  %s29_s12 = sshll.u32 %s794_s3, 4  ;;  %s30_s12 = int_to_ptr.hbm [resolvable:$true] %s29_s12 }
   0x7   :  { %s74_s28 = sshll.u32 %s658_s27, 4  ;;  %s62_s14 = sshll.u32 %s799_s8, 4  ;;  %s75_s28 = int_to_ptr.vmem [resolvable:$true] %s74_s28  ;;  %s63_s14 = int_to_ptr.hbm [resolvable:$true] %s62_s14 }
   0x8   :  { %80 = dma.hbm_to_vmem [thread:$0]  %s73_s24, 1024, %s75_s28, [#allocation8], %s656_s25, %s656_s25, %s657_s26  }
   0x9   :  { %s659_s15 = smov [#allocation2]   ;;  %s660_s9 = smov [#allocation6]  }
   0xa   :  { %s31_s16 = sshll.u32 %s659_s15, 4  ;;  %s64_s17 = sshll.u32 %s660_s9, 4  ;;  %s32_s16 = int_to_ptr.vmem [resolvable:$true] %s31_s16  ;;  %s65_s17 = int_to_ptr.vmem [resolvable:$true] %s64_s17 }
   0xb   :  { %37 = dma.hbm_to_vmem [thread:$0]  %s30_s12, 128, %s32_s16, [#allocation3], %s656_s25, %s656_s25, %s657_s26  }
   0xc   :  { %s86_s20 = sshll.u32 %s801_s10, 4  ;;  %s661_s3 = smov [#allocation9]   ;;  %s87_s20 = int_to_ptr.hbm [resolvable:$true] %s86_s20 }
   0xd   :  { %67 = dma.hbm_to_vmem [thread:$0]  %s63_s14, 16, %s65_s17, [#allocation5]  }
   0xe   :  { %s88_s21 = sshll.u32 %s661_s3, 4  ;;  %s89_s21 = int_to_ptr.vmem [resolvable:$true] %s88_s21 }
   0xf   :  { %91 = dma.hbm_to_vmem [thread:$0]  %s87_s20, 16, %s89_s21, [#allocation8]  }
  0x10   :  { %649 = dma.done.wait [#allocation3], 128  }
  0x11   :  { %650 = vsyncadd [#allocation3], 4294967168 }
  0x12   :  { %651 = dma.done.wait [#allocation5], 272  }
  0x13   :  { %652 = vsyncadd [#allocation5], 4294967024 }
  0x14   :  { %653 = dma.done.wait [#allocation8], 1040  }
  0x15   :  { %654 = vsyncadd [#allocation8], 4294966256  ;;  %v493_v0 = vld [vmem:[#allocation2] sm:$0xff]  ;;  %v497_v1 = vld [vmem:[#allocation4 + $0x8] sm:$0xff]  ;;  %vm128_vm0 = vcmask 130048   ;;  %vm170_vm1 = vcmask 261120  }
  0x16   :  { %v113_v2 = vld [vmem:[%s791_s0] sm:$0xff]  ;;  %v114_v3 = vld [vmem:[%s791_s0 + $0x8] sm:$0xff]  ;;  %139 = vmatpush.bf16.msra.mxu1 %v493_v0  ;;  %219 = vmatpush.bf16.msra.mxu2 %v497_v1  ;;  %v505_v10 = vld [vmem:[%s796_s5 + $0x38] sm:$0xff] }
  0x17   :  { %v495_v4 = vld [vmem:[%s797_s6 + $0x8] sm:$0xff]  ;;  %v115_v5 = vpack.c.bf16 %v114_v3, %v113_v2  ;;  %v150_v7 = vld [vmem:[%s793_s2] sm:$0xff]  ;;  %375 = vmatpush.bf16.msra.mxu0 %v505_v10  ;;  %v504_v12 = vld [vmem:[%s796_s5 + $0x30] sm:$0xff] }
  0x18   :  { %v496_v6 = vld [vmem:[#allocation4] sm:$0xff]  ;;  %v494_v9 = vld [vmem:[%s797_s6] sm:$0xff]  ;;  %v501_v18 = vld [vmem:[%s796_s5 + $0x18] sm:$0xff] }
  0x19   :  { %v151_v8 = vld [vmem:[%s793_s2 + $0x8] sm:$0xff]  ;;  %410 = vmatmul.msk.bf16.vlgmr.msra.gmra.mxu1 %vm128_vm0, %v115_v5  ;;  %v502_v14 = vld [vmem:[%s796_s5 + $0x20] sm:$0xff]  ;;  %v513_v19 = vld [vmem:[#allocation7 + $0x38] sm:$0xff] }
  0x1a   :  { %180 = vmatpush.bf16.msrb.mxu1 %v495_v4  ;;  %v193_v11 = vpack.c.bf16 %v151_v8, %v150_v7  ;;  %220 = vmatpush.bf16.msra.mxu2 %v496_v6  ;;  %v503_v13 = vld [vmem:[%s796_s5 + $0x28] sm:$0xff]  ;;  %v148_v15 = vld [vmem:[%s792_s1] sm:$0xff]  ;;  %v500_v20 = vld [vmem:[%s796_s5 + $0x10] sm:$0xff] }
  0x1b   :  { %376 = vmatpush.bf16.msra.mxu0 %v504_v12  ;;  %v149_v16 = vld [vmem:[%s792_s1 + $0x8] sm:$0xff]  ;;  %313 = vmatpush.bf16.msra.mxu3 %v513_v19  ;;  %v498_v24 = vld [vmem:[%s796_s5] sm:$0xff]  ;;  %v509_v26 = vld [vmem:[#allocation7 + $0x18] sm:$0xff] }
  0x1c   :  { %v153_v17 = vpack.c.bf16 %v149_v16, %v148_v15  ;;  %v512_v21 = vld [vmem:[#allocation7 + $0x30] sm:$0xff]  ;;  %v511_v23 = vld [vmem:[#allocation7 + $0x28] sm:$0xff]  ;;  %v510_v25 = vld [vmem:[#allocation7 + $0x20] sm:$0xff] }
  0x1d   :  { %428 = vmatmul.msk.bf16.vlgmr.msra.gmra.mxu2 %vm170_vm1, %v193_v11  ;;  %v499_v22 = vld [vmem:[%s796_s5 + $0x8] sm:$0xff]  ;;  %v506_v29 = vld [vmem:[#allocation7] sm:$0xff]  ;;  %v527_v40 = vld [vmem:[#allocation6] ss:$0 sm:$0xff] }
  0x1e   :  { %181 = vmatpush.bf16.msrb.mxu1 %v494_v9  ;;  %v508_v27 = vld [vmem:[#allocation7 + $0x10] sm:$0xff]  ;;  %v507_v28 = vld [vmem:[#allocation7 + $0x8] sm:$0xff]  ;;  %v526_v31 = vld [vmem:[%s795_s4] ss:$0 sm:$0xff] }
  0x1f   :  { %377 = vmatpush.bf16.msra.mxu0 %v503_v13  ;;  %314 = vmatpush.bf16.msra.mxu3 %v512_v21  ;;  %v528_v53 = vld [vmem:[#allocation9] ss:$0 sm:$0xff] }
  0x23   :  { %378 = vmatpush.bf16.msra.mxu0 %v502_v14  ;;  %315 = vmatpush.bf16.msra.mxu3 %v511_v23 }
  0x27   :  { %379 = vmatpush.bf16.msra.mxu0 %v501_v18  ;;  %316 = vmatpush.bf16.msra.mxu3 %v510_v25 }
  0x29   :  { %419 = vmatmul.msk.bf16.vlgmr.msrb.gmra.mxu1 %vm170_vm1, %v153_v17 }
  0x2b   :  { %380 = vmatpush.bf16.msra.mxu0 %v500_v20  ;;  %317 = vmatpush.bf16.msra.mxu3 %v509_v26 }
  0x2f   :  { %381 = vmatpush.bf16.msra.mxu0 %v499_v22  ;;  %318 = vmatpush.bf16.msra.mxu3 %v508_v27 }
  0x33   :  { %382 = vmatpush.bf16.msra.mxu0 %v498_v24  ;;  %319 = vmatpush.bf16.msra.mxu3 %v507_v28 }
  0x37   :  { %320 = vmatpush.bf16.msra.mxu3 %v506_v29 }
  0x96   :  { %v141_v30 = vpop.f32.mrf.mxu1 }
  0x97   :  { %v142_v32 = vadd.f32 %v526_v31, %v141_v30 }
  0x99   :  { %v146_v35 = vmax.f32 %v142_v32, 0.0 }
  0x9e   :  { %v143_v33 = vpop.f32.mrf.mxu1 }
  0x9f   :  { %v144_v34 = vadd.f32 %v526_v31, %v143_v33 }
  0xa0   :  { %v222_v38 = vpop.f32.mrf.mxu2 }
  0xa1   :  { %v147_v36 = vmax.f32 %v144_v34, 0.0 }
  0xa3   :  { %v231_v37 = vpack.c.bf16 %v147_v36, %v146_v35 }
  0xa5   :  { %383 = vmatmul.bf16.vlgmr.msra.gmra.mxu0 %v231_v37 }
  0xa6   :  { %v183_v39 = vpop.f32.mrf.mxu1 }
  0xa7   :  { %v191_v41 = vadd.f32 %v527_v40, %v183_v39 }
  0xa8   :  { %v224_v45 = vpop.f32.mrf.mxu2 }
  0xa9   :  { %v227_v43 = vadd.f32 %v222_v38, %v191_v41 }
  0xab   :  { %v229_v47 = vmax.f32 %v227_v43, 0.0 }
  0xae   :  { %v185_v42 = vpop.f32.mrf.mxu1 }
  0xaf   :  { %v192_v44 = vadd.f32 %v527_v40, %v185_v42 }
  0xb1   :  { %v228_v46 = vadd.f32 %v224_v45, %v192_v44 }
  0xb3   :  { %v230_v48 = vmax.f32 %v228_v46, 0.0 }
  0xb5   :  { %v248_v49 = vpack.c.bf16 %v230_v48, %v229_v47 }
  0xb7   :  { %321 = vmatmul.bf16.vlgmr.msra.gmra.mxu3 %v248_v49 }
 0x122   :  { %v384_v50 = vpop.f32.mrf.mxu0 }
 0x12a   :  { %v386_v54 = vpop.f32.mrf.mxu0 }
 0x13a   :  { %v322_v51 = vpop.f32.mrf.mxu3 }
 0x13b   :  { %v385_v52 = vadd.f32 %v384_v50, %v322_v51 }
 0x13d   :  { %v393_v57 = vadd.f32 %v528_v53, %v385_v52 }
 0x142   :  { %v324_v55 = vpop.f32.mrf.mxu3 }
 0x143   :  { %v387_v56 = vadd.f32 %v386_v54, %v324_v55 }
 0x145   :  { %v394_v58 = vadd.f32 %v528_v53, %v387_v56 }
 0x147   :  { %v517_v59 = vpack.c.bf16 %v394_v58, %v393_v57 }
 0x149   :  { %518 = vst [vmem:[%s802_s11] sm:$0xff] %v517_v59  }
 0x14a   :  { %403 = vsyncpa [#allocation3], 1 }
 0x14b   :  { %404 = vsyncpa [#allocation5], 1 }
 0x14c   :  { %405 = vsyncpa [#allocation8], 1 }

// kernel: _cic_forward_impl.1
= control target key start
LH: loop header
LB: loop body
LE: loop exit
PB: predicated region body
PF: predicated region fallthrough
CT: control target
= control target key end

     0   :  { %16 = vsyncpa [#allocation3], 0  ;;  %s791_s0 = inlined_call_operand.vmem [shape: f32[16,16], index: 0, kind: input, shape index: {}]   ;;  %s792_s1 = inlined_call_operand.vmem [shape: f32[16,32], index: 1, kind: input, shape index: {}]   ;;  %s793_s2 = inlined_call_operand.vmem [shape: f32[16,32], index: 2, kind: input, shape index: {}]   ;;  %s794_s3 = inlined_call_operand.hbm [shape: bf16[16,128], index: 3, kind: input, shape index: {}]   ;;  %s795_s4 = inlined_call_operand.vmem [shape: f32[1,128], index: 4, kind: input, shape index: {}]   ;;  %s796_s5 = inlined_call_operand.vmem [shape: bf16[128,128], index: 5, kind: input, shape index: {}]   ;;  %s797_s6 = inlined_call_operand.vmem [shape: bf16[32,128], index: 6, kind: input, shape index: {}]   ;;  %s798_s7 = inlined_call_operand.hbm [shape: bf16[32,128], index: 7, kind: input, shape index: {}]   ;;  %s799_s8 = inlined_call_operand.hbm [shape: f32[1,128], index: 8, kind: input, shape index: {}]   ;;  %s800_s9 = inlined_call_operand.hbm [shape: bf16[128,128], index: 9, kind: input, shape index: {}]   ;;  %s801_s10 = inlined_call_operand.hbm [shape: f32[1,128], index: 10, kind: input, shape index: {}]   ;;  %s802_s11 = inlined_call_operand.vmem [shape: bf16[16,128], index: 11, kind: output, shape index: {}]  }
   0x1   :  { %17 = vsyncpa [#allocation5], 0 }
   0x2   :  { %18 = vsyncpa [#allocation8], 0  ;;  %s48_s19 = sshll.u32 %s798_s7, 4  ;;  %s655_s20 = smov [#allocation4]   ;;  %s49_s19 = int_to_ptr.hbm [resolvable:$true] %s48_s19 }
   0x3   :  { %s50_s21 = sshll.u32 %s655_s20, 4  ;;  %s72_s24 = sshll.u32 %s800_s9, 4  ;;  %s51_s21 = int_to_ptr.vmem [resolvable:$true] %s50_s21  ;;  %s73_s24 = int_to_ptr.hbm [resolvable:$true] %s72_s24 }
   0x4   :  { %s656_s25 = smov 64   ;;  %s657_s26 = smov 4  }
   0x5   :  { %56 = dma.hbm_to_vmem [thread:$0]  %s49_s19, 256, %s51_s21, [#allocation5], %s656_s25, %s656_s25, %s657_s26  }
   0x6   :  { %s658_s27 = smov [#allocation7]   ;;  %s29_s12 = sshll.u32 %s794_s3, 4  ;;  %s30_s12 = int_to_ptr.hbm [resolvable:$true] %s29_s12 }
   0x7   :  { %s74_s28 = sshll.u32 %s658_s27, 4  ;;  %s62_s14 = sshll.u32 %s799_s8, 4  ;;  %s75_s28 = int_to_ptr.vmem [resolvable:$true] %s74_s28  ;;  %s63_s14 = int_to_ptr.hbm [resolvable:$true] %s62_s14 }
   0x8   :  { %80 = dma.hbm_to_vmem [thread:$0]  %s73_s24, 1024, %s75_s28, [#allocation8], %s656_s25, %s656_s25, %s657_s26  }
   0x9   :  { %s659_s15 = smov [#allocation2]   ;;  %s660_s9 = smov [#allocation6]  }
   0xa   :  { %s31_s16 = sshll.u32 %s659_s15, 4  ;;  %s64_s17 = sshll.u32 %s660_s9, 4  ;;  %s32_s16 = int_to_ptr.vmem [resolvable:$true] %s31_s16  ;;  %s65_s17 = int_to_ptr.vmem [resolvable:$true] %s64_s17 }
   0xb   :  { %37 = dma.hbm_to_vmem [thread:$0]  %s30_s12, 128, %s32_s16, [#allocation3], %s656_s25, %s656_s25, %s657_s26  }
   0xc   :  { %s86_s20 = sshll.u32 %s801_s10, 4  ;;  %s661_s3 = smov [#allocation9]   ;;  %s87_s20 = int_to_ptr.hbm [resolvable:$true] %s86_s20 }
   0xd   :  { %67 = dma.hbm_to_vmem [thread:$0]  %s63_s14, 16, %s65_s17, [#allocation5]  }
   0xe   :  { %s88_s21 = sshll.u32 %s661_s3, 4  ;;  %s89_s21 = int_to_ptr.vmem [resolvable:$true] %s88_s21 }
   0xf   :  { %91 = dma.hbm_to_vmem [thread:$0]  %s87_s20, 16, %s89_s21, [#allocation8]  }
  0x10   :  { %649 = dma.done.wait [#allocation3], 128  }
  0x11   :  { %650 = vsyncadd [#allocation3], 4294967168 }
  0x12   :  { %651 = dma.done.wait [#allocation5], 272  }
  0x13   :  { %652 = vsyncadd [#allocation5], 4294967024 }
  0x14   :  { %653 = dma.done.wait [#allocation8], 1040  }
  0x15   :  { %654 = vsyncadd [#allocation8], 4294966256  ;;  %v493_v0 = vld [vmem:[#allocation2] sm:$0xff]  ;;  %v497_v1 = vld [vmem:[#allocation4 + $0x8] sm:$0xff]  ;;  %vm128_vm0 = vcmask 130048   ;;  %vm170_vm1 = vcmask 261120  }
  0x16   :  { %v113_v2 = vld [vmem:[%s791_s0] sm:$0xff]  ;;  %v114_v3 = vld [vmem:[%s791_s0 + $0x8] sm:$0xff]  ;;  %139 = vmatpush.bf16.msra.mxu1 %v493_v0  ;;  %219 = vmatpush.bf16.msra.mxu2 %v497_v1  ;;  %v505_v10 = vld [vmem:[%s796_s5 + $0x38] sm:$0xff] }
  0x17   :  { %v495_v4 = vld [vmem:[%s797_s6 + $0x8] sm:$0xff]  ;;  %v115_v5 = vpack.c.bf16 %v114_v3, %v113_v2  ;;  %v150_v7 = vld [vmem:[%s793_s2] sm:$0xff]  ;;  %375 = vmatpush.bf16.msra.mxu0 %v505_v10  ;;  %v504_v12 = vld [vmem:[%s796_s5 + $0x30] sm:$0xff] }
  0x18   :  { %v496_v6 = vld [vmem:[#allocation4] sm:$0xff]  ;;  %v494_v9 = vld [vmem:[%s797_s6] sm:$0xff]  ;;  %v501_v18 = vld [vmem:[%s796_s5 + $0x18] sm:$0xff] }
  0x19   :  { %v151_v8 = vld [vmem:[%s793_s2 + $0x8] sm:$0xff]  ;;  %410 = vmatmul.msk.bf16.vlgmr.msra.gmra.mxu1 %vm128_vm0, %v115_v5  ;;  %v502_v14 = vld [vmem:[%s796_s5 + $0x20] sm:$0xff]  ;;  %v513_v19 = vld [vmem:[#allocation7 + $0x38] sm:$0xff] }
  0x1a   :  { %180 = vmatpush.bf16.msrb.mxu1 %v495_v4  ;;  %v193_v11 = vpack.c.bf16 %v151_v8, %v150_v7  ;;  %220 = vmatpush.bf16.msra.mxu2 %v496_v6  ;;  %v503_v13 = vld [vmem:[%s796_s5 + $0x28] sm:$0xff]  ;;  %v148_v15 = vld [vmem:[%s792_s1] sm:$0xff]  ;;  %v500_v20 = vld [vmem:[%s796_s5 + $0x10] sm:$0xff] }
  0x1b   :  { %376 = vmatpush.bf16.msra.mxu0 %v504_v12  ;;  %v149_v16 = vld [vmem:[%s792_s1 + $0x8] sm:$0xff]  ;;  %313 = vmatpush.bf16.msra.mxu3 %v513_v19  ;;  %v498_v24 = vld [vmem:[%s796_s5] sm:$0xff]  ;;  %v509_v26 = vld [vmem:[#allocation7 + $0x18] sm:$0xff] }
  0x1c   :  { %v153_v17 = vpack.c.bf16 %v149_v16, %v148_v15  ;;  %v512_v21 = vld [vmem:[#allocation7 + $0x30] sm:$0xff]  ;;  %v511_v23 = vld [vmem:[#allocation7 + $0x28] sm:$0xff]  ;;  %v510_v25 = vld [vmem:[#allocation7 + $0x20] sm:$0xff] }
  0x1d   :  { %428 = vmatmul.msk.bf16.vlgmr.msra.gmra.mxu2 %vm170_vm1, %v193_v11  ;;  %v499_v22 = vld [vmem:[%s796_s5 + $0x8] sm:$0xff]  ;;  %v506_v29 = vld [vmem:[#allocation7] sm:$0xff]  ;;  %v527_v40 = vld [vmem:[#allocation6] ss:$0 sm:$0xff] }
  0x1e   :  { %181 = vmatpush.bf16.msrb.mxu1 %v494_v9  ;;  %v508_v27 = vld [vmem:[#allocation7 + $0x10] sm:$0xff]  ;;  %v507_v28 = vld [vmem:[#allocation7 + $0x8] sm:$0xff]  ;;  %v526_v31 = vld [vmem:[%s795_s4] ss:$0 sm:$0xff] }
  0x1f   :  { %377 = vmatpush.bf16.msra.mxu0 %v503_v13  ;;  %314 = vmatpush.bf16.msra.mxu3 %v512_v21  ;;  %v528_v53 = vld [vmem:[#allocation9] ss:$0 sm:$0xff] }
  0x23   :  { %378 = vmatpush.bf16.msra.mxu0 %v502_v14  ;;  %315 = vmatpush.bf16.msra.mxu3 %v511_v23 }
  0x27   :  { %379 = vmatpush.bf16.msra.mxu0 %v501_v18  ;;  %316 = vmatpush.bf16.msra.mxu3 %v510_v25 }
  0x29   :  { %419 = vmatmul.msk.bf16.vlgmr.msrb.gmra.mxu1 %vm170_vm1, %v153_v17 }
  0x2b   :  { %380 = vmatpush.bf16.msra.mxu0 %v500_v20  ;;  %317 = vmatpush.bf16.msra.mxu3 %v509_v26 }
  0x2f   :  { %381 = vmatpush.bf16.msra.mxu0 %v499_v22  ;;  %318 = vmatpush.bf16.msra.mxu3 %v508_v27 }
  0x33   :  { %382 = vmatpush.bf16.msra.mxu0 %v498_v24  ;;  %319 = vmatpush.bf16.msra.mxu3 %v507_v28 }
  0x37   :  { %320 = vmatpush.bf16.msra.mxu3 %v506_v29 }
  0x96   :  { %v141_v30 = vpop.f32.mrf.mxu1 }
  0x97   :  { %v142_v32 = vadd.f32 %v526_v31, %v141_v30 }
  0x99   :  { %v146_v35 = vmax.f32 %v142_v32, 0.0 }
  0x9e   :  { %v143_v33 = vpop.f32.mrf.mxu1 }
  0x9f   :  { %v144_v34 = vadd.f32 %v526_v31, %v143_v33 }
  0xa0   :  { %v222_v38 = vpop.f32.mrf.mxu2 }
  0xa1   :  { %v147_v36 = vmax.f32 %v144_v34, 0.0 }
  0xa3   :  { %v231_v37 = vpack.c.bf16 %v147_v36, %v146_v35 }
  0xa5   :  { %383 = vmatmul.bf16.vlgmr.msra.gmra.mxu0 %v231_v37 }
  0xa6   :  { %v183_v39 = vpop.f32.mrf.mxu1 }
  0xa7   :  { %v191_v41 = vadd.f32 %v527_v40, %v183_v39 }
  0xa8   :  { %v224_v45 = vpop.f32.mrf.mxu2 }
  0xa9   :  { %v227_v43 = vadd.f32 %v222_v38, %v191_v41 }
  0xab   :  { %v229_v47 = vmax.f32 %v227_v43, 0.0 }
  0xae   :  { %v185_v42 = vpop.f32.mrf.mxu1 }
  0xaf   :  { %v192_v44 = vadd.f32 %v527_v40, %v185_v42 }
  0xb1   :  { %v228_v46 = vadd.f32 %v224_v45, %v192_v44 }
  0xb3   :  { %v230_v48 = vmax.f32 %v228_v46, 0.0 }
  0xb5   :  { %v248_v49 = vpack.c.bf16 %v230_v48, %v229_v47 }
  0xb7   :  { %321 = vmatmul.bf16.vlgmr.msra.gmra.mxu3 %v248_v49 }
 0x122   :  { %v384_v50 = vpop.f32.mrf.mxu0 }
 0x12a   :  { %v386_v54 = vpop.f32.mrf.mxu0 }
 0x13a   :  { %v322_v51 = vpop.f32.mrf.mxu3 }
 0x13b   :  { %v385_v52 = vadd.f32 %v384_v50, %v322_v51 }
 0x13d   :  { %v393_v57 = vadd.f32 %v528_v53, %v385_v52 }
 0x142   :  { %v324_v55 = vpop.f32.mrf.mxu3 }
 0x143   :  { %v387_v56 = vadd.f32 %v386_v54, %v324_v55 }
 0x145   :  { %v394_v58 = vadd.f32 %v528_v53, %v387_v56 }
 0x147   :  { %v517_v59 = vpack.c.bf16 %v394_v58, %v393_v57 }
 0x149   :  { %518 = vst [vmem:[%s802_s11] sm:$0xff] %v517_v59  }
 0x14a   :  { %403 = vsyncpa [#allocation3], 1 }
 0x14b   :  { %404 = vsyncpa [#allocation5], 1 }
 0x14c   :  { %405 = vsyncpa [#allocation8], 1 }

</bundles_post_ra>
